<compile_context>
chip_gen: v7x
topology: tpu7x:2x2x1
jax: 0.10.0
libtpu: 0.0.40
codegen_flags: <defaults>
</compile_context>

<pallas_src>
import numpy as np
import jax
import jax.numpy as jnp
from jax.experimental import pallas as pl
from jax.experimental.pallas import tpu as pltpu


def spatial_attention_kernel(x_ref, t_ref, b_ref, o_ref):
    """x_ref: (B, C, H*W) VMEM; t_ref: (2*H*W, H*W) VMEM; b_ref: (1,1) SMEM; o_ref: (B, H*W) VMEM."""
    x = x_ref[...]                                    # (B, C, HW)
    mx = jnp.max(x, axis=1)                           # channel max  (B, HW)
    sm = jnp.sum(x, axis=1)                           # channel sum  (B, HW); 1/C folded into slab
    feat = jnp.concatenate([mx, sm], axis=-1)         # (B, 2*HW) -- halves meet at a 128-lane boundary
    out = jnp.dot(feat, t_ref[...],
                  preferred_element_type=jnp.float32)  # (B, HW) single MXU matmul = full 7x7 conv
    o_ref[...] = out + b_ref[0, 0]                    # lane-dense unmasked store


def build_conv_toeplitz(weight, H, W, C):
    """Host-side (numpy) packing of Conv2d(2, 1, K, K) weights into T of shape (2*H*W, H*W):

        out[yo*W + xo] = sum_{c, yi, xi} feat_flat[c*H*W + yi*W + xi] * T[c*H*W + yi*W + xi, yo*W + xo]

    with T[c, yi, xi, yo, xo] = w[0, c, yi - yo + P, xi - xo + P] (zero outside the 7x7 window),
    i.e. the zero-padded 'same' convolution.  The mean channel (c=1) rows are pre-scaled by 1/C
    so the kernel can feed a plain channel SUM.
    """
    w = np.asarray(weight, dtype=np.float32)[0]       # (2, K, K)
    K = w.shape[-1]
    P = K // 2
    HW = H * W
    di = np.arange(H)[:, None] - np.arange(H)[None, :] + P    # (H, H): tap row index
    dj = np.arange(W)[:, None] - np.arange(W)[None, :] + P    # (W, W): tap col index
    vi = (di >= 0) & (di < K)
    vj = (dj >= 0) & (dj < K)
    dic = np.clip(di, 0, K - 1)
    djc = np.clip(dj, 0, K - 1)
    mask = vi[:, None, :, None] & vj[None, :, None, :]        # (H, W, H, W)
    T = np.zeros((2, H, W, H, W), dtype=np.float32)
    for c in range(2):
        taps = w[c][dic[:, None, :, None], djc[None, :, None, :]]   # (H, W, H, W)
        T[c] = np.where(mask, taps, 0.0)
    T[1] *= 1.0 / float(C)                                    # fold mean divide into the slab
    return T.reshape(2 * HW, HW)


def make_spatial_attention(weight, bias, *, B, C, H, W):
    """Builds the Toeplitz slab ONCE (host-side numpy) and returns a jitted forward fn."""
    HW = H * W
    t_slab = jnp.asarray(build_conv_toeplitz(weight, H, W, C))             # (2*HW, HW) f32, 512 KB
    b_smem = jnp.asarray(np.asarray(bias, np.float32).reshape(1, 1))       # scalar bias -> SMEM

    kernel_fn = pl.pallas_call(
        spatial_attention_kernel,
        out_shape=jax.ShapeDtypeStruct((B, HW), jnp.float32),
        in_specs=[
            pl.BlockSpec(memory_space=pltpu.MemorySpace.VMEM),   # x as (B, C, HW)
            pl.BlockSpec(memory_space=pltpu.MemorySpace.VMEM),   # packed conv Toeplitz slab
            pl.BlockSpec(memory_space=pltpu.MemorySpace.SMEM),   # conv bias scalar
        ],
        out_specs=pl.BlockSpec(memory_space=pltpu.MemorySpace.VMEM),
        cost_estimate=pl.CostEstimate(
            flops=2 * B * (2 * HW) * HW,
            transcendentals=0,
            bytes_accessed=4 * (B * C * HW + 2 * HW * HW + B * HW),
        ),
    )

    @jax.jit
    def forward(x):
        x_flat = x.reshape(B, C, HW)            # free contiguous metadata reshape
        out = kernel_fn(x_flat, t_slab, b_smem)  # (B, HW) lane-dense
        return out.reshape(B, 1, H, W)          # free metadata reshape back

    return forward


# --- pure-JAX reference (mirrors the PyTorch forward) -------------------------
def reference(x, weight, bias):
    mx = jnp.max(x, axis=1, keepdims=True)
    av = jnp.mean(x, axis=1, keepdims=True)
    feat = jnp.concatenate([mx, av], axis=1)    # (B, 2, H, W)
    K = weight.shape[-1]
    P = K // 2
    out = jax.lax.conv_general_dilated(
        feat, weight, window_strides=(1, 1), padding=((P, P), (P, P)),
        dimension_numbers=('NCHW', 'OIHW', 'NCHW'))
    return out + bias.reshape(1, -1, 1, 1)


if __name__ == "__main__":
    B, C, H, W, K = 2, 4, 16, 16, 7
    key = jax.random.PRNGKey(0)
    kx, kw, kb = jax.random.split(key, 3)
    x = jax.random.normal(kx, (B, C, H, W), dtype=jnp.float32)
    weight = jax.random.normal(kw, (1, 2, K, K), dtype=jnp.float32) * 0.1   # Conv2d(2,1,7,7) weight
    bias = jax.random.normal(kb, (1,), dtype=jnp.float32) * 0.1             # Conv2d bias

    fwd = make_spatial_attention(weight, bias, B=B, C=C, H=H, W=W)
    out = jax.block_until_ready(fwd(x))

    ref = reference(x, weight, bias)
    assert out.shape == (B, 1, H, W)
    err = jnp.max(jnp.abs(out - ref))
    assert err < 1e-3, f"mismatch vs reference: {err}"
    print("KERNEL_OK")
</pallas_src>

<mosaic_0001>
module attributes {stable_mosaic.version = 11 : i64} {
  func.func @spatial_attention_kernel(%arg0: memref<2x4x256xf32, #tpu.memory_space<vmem>>, %arg1: memref<512x256xf32, #tpu.memory_space<vmem>>, %arg2: memref<1x1xf32, #tpu.memory_space<smem>>, %arg3: memref<2x256xf32, #tpu.memory_space<vmem>>) attributes {dimension_semantics = [], scalar_prefetch = 0 : i64, scratch_operands = 0 : i64, tpu.core_type = #tpu.core_type<tc>} {
    %c0 = arith.constant 0 : index
    %c0_0 = arith.constant 0 : index
    %c0_1 = arith.constant 0 : index
    %0 = vector.load %arg0[%c0, %c0_0, %c0_1] : memref<2x4x256xf32, #tpu.memory_space<vmem>>, vector<2x4x256xf32>
    %cst = arith.constant dense<0xFF800000> : vector<2x256xf32>
    %1 = vector.multi_reduction <maximumf>, %0, %cst [1] : vector<2x4x256xf32> to vector<2x256xf32>
    %cst_2 = arith.constant dense<0.000000e+00> : vector<2x256xf32>
    %2 = vector.multi_reduction <add>, %0, %cst_2 [1] : vector<2x4x256xf32> to vector<2x256xf32>
    %3 = tpu.concatenate %1, %2 in 1 : vector<2x256xf32>, vector<2x256xf32> -> vector<2x512xf32>
    %c0_3 = arith.constant 0 : index
    %c0_4 = arith.constant 0 : index
    %4 = vector.load %arg1[%c0_3, %c0_4] : memref<512x256xf32, #tpu.memory_space<vmem>>, vector<512x256xf32>
    %cst_5 = arith.constant dense<0.000000e+00> : vector<2x256xf32>
    %5 = tpu.matmul %3, %4, %cst_5 {dimension_numbers = #tpu.dot_dimension_numbers<[1], [0], [0], [1], [0, 0, 1, 1], [], []>} : vector<2x512xf32>, vector<512x256xf32>, vector<2x256xf32> -> vector<2x256xf32>
    %c0_6 = arith.constant 0 : index
    %c0_7 = arith.constant 0 : index
    %6 = memref.load %arg2[%c0_6, %c0_7] : memref<1x1xf32, #tpu.memory_space<smem>>
    %7 = vector.broadcast %6 : f32 to vector<2x256xf32>
    %8 = arith.addf %5, %7 : vector<2x256xf32>
    %c0_8 = arith.constant 0 : index
    %c0_9 = arith.constant 0 : index
    %9 = vector.load %arg3[%c0_8, %c0_9] : memref<2x256xf32, #tpu.memory_space<vmem>>, vector<2x256xf32>
    tpu.vector_store %arg3[%c0_8, %c0_9], %8 {strides = array<i32>} : memref<2x256xf32, #tpu.memory_space<vmem>>, vector<2x256xf32>,
    return
  }
}

</mosaic_0001>

<bundles_post_ra>
// kernel: forward.1
= control target key start
LH: loop header
LB: loop body
LE: loop exit
PB: predicated region body
PF: predicated region fallthrough
CT: control target
= control target key end

     0   :  { %9 = vsyncpa [#allocation4], 0  ;;  %s562_s12 = smov [#allocation3]   ;;  %s693_s0 = inlined_call_operand.vmem [shape: f32[2,4,256], index: 0, kind: input, shape index: {}]   ;;  %s694_s1 = inlined_call_operand.hbm [shape: f32[512,256], index: 1, kind: input, shape index: {}]   ;;  %s695_s2 = inlined_call_operand.<no memory space> [shape: f32[1,1], index: 2, kind: input, shape index: {}]   ;;  %s696_s3 = inlined_call_operand.vmem [shape: f32[2,256], index: 3, kind: output, shape index: {}]  }
   0x1   :  { %s17_s13 = sshll.u32 %s562_s12, 4  ;;  %s538_s16 = scalar_lea.hbm %s694_s1, 16384  ;;  %s18_s13 = int_to_ptr.vmem [resolvable:$true] %s17_s13 }
   0x2   :  { %p539_p0 = scmp.ne.s32.totalorder %s694_s1, %s538_s16  ;;  %p542_p1 = scmp.lt.u32.totalorder %s538_s16, %s694_s1 }
   0x4   :  { %p544_p2 = pnand %p542_p1, %p539_p0 }
   0x6   :  { %547 = shalt.err (!%p544_p2)
}
   0x7   :  { %s548_s21 = scalar_lea.vmem %s18_s13, 16384  ;;  %p553_p4 = scmp.lt.s32.totalorder %s18_s13, %s18_s13 }
   0x8   :  { %p549_p3 = scmp.ne.s32.totalorder %s18_s13, %s548_s21  ;;  %p554_p5 = scmp.lt.s32.totalorder %s548_s21, %s548_s21 }
   0xa   :  { %p555_p6 = por %p554_p5, %p553_p4 }
   0xc   :  { %p556_p7 = pnand %p555_p6, %p549_p3 }
   0xe   :  { %559 = shalt.err (!%p556_p7)
}
   0xf   :  { %s563_s22 = smov 256   ;;  %s564_s23 = smov 16  }
  0x10   :  { %23 = dma.hbm_to_vmem [thread:$0]  %s694_s1, 16384, %s18_s13, [#allocation4], %s563_s22, %s563_s22, %s564_s23  }
  0x11   :  { %560 = dma.done.wait [#allocation4], 16384  }
  0x12   :  { %561 = vsyncadd [#allocation4], 4294950912  ;;  %v112_v0 = vld [vmem:[#allocation3 + $0x8] sm:$0xff]  ;;  %v114_v1 = vld [vmem:[#allocation3 + $0x18] sm:$0xff]  ;;  %vm37_vm0 = vcmask 1043456   ;;  %vm98_vm1 = vcmask 1041409  }
  0x13   :  { %v111_v2 = vld [vmem:[#allocation3] sm:$0xff]  ;;  %v401_v3 = vpack.c.bf16 %v114_v1, %v112_v0  ;;  %v113_v4 = vld [vmem:[#allocation3 + $0x10] sm:$0xff]  ;;  %v176_v5 = vld [vmem:[#allocation3 + $0x208] sm:$0xff] }
  0x14   :  { %v178_v6 = vld [vmem:[#allocation3 + $0x218] sm:$0xff]  ;;  %v403_v7 = vpack.c.bf16 %v113_v4, %v111_v2  ;;  %v175_v9 = vld [vmem:[#allocation3 + $0x200] sm:$0xff]  ;;  %v177_v10 = vld [vmem:[#allocation3 + $0x210] sm:$0xff] }
  0x15   :  { %v465_v8 = vpack.c.bf16 %v178_v6, %v176_v5  ;;  %v116_v11 = vld [vmem:[#allocation3 + $0x28] sm:$0xff]  ;;  %402 = vmatprep.subr.bf16.mxu1 %v401_v3  ;;  %v467_v12 = vpack.c.bf16 %v177_v10, %v175_v9  ;;  %v118_v13 = vld [vmem:[#allocation3 + $0x38] sm:$0xff]  ;;  %v115_v14 = vld [vmem:[#allocation3 + $0x20] sm:$0xff] }
  0x16   :  { %v117_v15 = vld [vmem:[#allocation3 + $0x30] sm:$0xff]  ;;  %404 = vmatpush1.bf16.msra.mxu1 %v403_v7  ;;  %v405_v16 = vpack.c.bf16 %v118_v13, %v116_v11  ;;  %v180_v18 = vld [vmem:[#allocation3 + $0x228] sm:$0xff]  ;;  %v182_v19 = vld [vmem:[#allocation3 + $0x238] sm:$0xff] }
  0x17   :  { %466 = vmatprep.subr.bf16.mxu0 %v465_v8  ;;  %v407_v17 = vpack.c.bf16 %v117_v15, %v115_v14  ;;  %v179_v20 = vld [vmem:[#allocation3 + $0x220] sm:$0xff]  ;;  %v469_v21 = vpack.c.bf16 %v182_v19, %v180_v18  ;;  %v181_v22 = vld [vmem:[#allocation3 + $0x230] sm:$0xff]  ;;  %v120_v23 = vld [vmem:[#allocation3 + $0x48] sm:$0xff] }
  0x18   :  { %468 = vmatpush1.bf16.msra.mxu0 %v467_v12  ;;  %v122_v24 = vld [vmem:[#allocation3 + $0x58] sm:$0xff]  ;;  %406 = vmatprep.subr.bf16.mxu1 %v405_v16  ;;  %v471_v25 = vpack.c.bf16 %v181_v22, %v179_v20  ;;  %v119_v27 = vld [vmem:[#allocation3 + $0x40] sm:$0xff]  ;;  %v121_v28 = vld [vmem:[#allocation3 + $0x50] sm:$0xff] }
  0x19   :  { %v409_v26 = vpack.c.bf16 %v122_v24, %v120_v23  ;;  %v184_v29 = vld [vmem:[#allocation3 + $0x248] sm:$0xff]  ;;  %470 = vmatprep.subr.bf16.mxu0 %v469_v21  ;;  %v186_v30 = vld [vmem:[#allocation3 + $0x258] sm:$0xff]  ;;  %v183_v31 = vld [vmem:[#allocation3 + $0x240] sm:$0xff]  ;;  %v411_v33 = vpack.c.bf16 %v121_v28, %v119_v27 }
  0x1a   :  { %v185_v32 = vld [vmem:[#allocation3 + $0x250] sm:$0xff]  ;;  %408 = vmatpush1.bf16.msra.mxu1 %v407_v17  ;;  %v473_v34 = vpack.c.bf16 %v186_v30, %v184_v29  ;;  %v124_v35 = vld [vmem:[#allocation3 + $0x68] sm:$0xff]  ;;  %v126_v36 = vld [vmem:[#allocation3 + $0x78] sm:$0xff] }
  0x1b   :  { %v123_v37 = vld [vmem:[#allocation3 + $0x60] sm:$0xff]  ;;  %410 = vmatprep.subr.bf16.mxu1 %v409_v26  ;;  %v475_v38 = vpack.c.bf16 %v185_v32, %v183_v31  ;;  %v413_v39 = vpack.c.bf16 %v126_v36, %v124_v35  ;;  %v125_v40 = vld [vmem:[#allocation3 + $0x70] sm:$0xff]  ;;  %v188_v41 = vld [vmem:[#allocation3 + $0x268] sm:$0xff] }
  0x1c   :  { %472 = vmatpush1.bf16.msra.mxu0 %v471_v25  ;;  %v190_v42 = vld [vmem:[#allocation3 + $0x278] sm:$0xff]  ;;  %v187_v44 = vld [vmem:[#allocation3 + $0x260] sm:$0xff]  ;;  %v189_v45 = vld [vmem:[#allocation3 + $0x270] sm:$0xff]  ;;  %v415_v48 = vpack.c.bf16 %v125_v40, %v123_v37 }
  0x1d   :  { %474 = vmatprep.subr.bf16.mxu0 %v473_v34  ;;  %v477_v43 = vpack.c.bf16 %v190_v42, %v188_v41  ;;  %v128_v46 = vld [vmem:[#allocation3 + $0x88] sm:$0xff]  ;;  %v130_v47 = vld [vmem:[#allocation3 + $0x98] sm:$0xff]  ;;  %v479_v51 = vpack.c.bf16 %v189_v45, %v187_v44  ;;  %v127_v53 = vld [vmem:[#allocation3 + $0x80] sm:$0xff] }
  0x1e   :  { %412 = vmatpush1.bf16.msra.mxu1 %v411_v33  ;;  %v192_v49 = vld [vmem:[#allocation3 + $0x288] sm:$0xff]  ;;  %v194_v50 = vld [vmem:[#allocation3 + $0x298] sm:$0xff]  ;;  %v417_v52 = vpack.c.bf16 %v130_v47, %v128_v46  ;;  %v129_v54 = vld [vmem:[#allocation3 + $0x90] sm:$0xff] }
  0x1f   :  { %414 = vmatprep.subr.bf16.mxu1 %v413_v39  ;;  %v191_v55 = vld [vmem:[#allocation3 + $0x280] sm:$0xff]  ;;  %v481_v56 = vpack.c.bf16 %v194_v50, %v192_v49  ;;  %v193_v57 = vld [vmem:[#allocation3 + $0x290] sm:$0xff]  ;;  %v132_v58 = vld [vmem:[#allocation3 + $0xa8] sm:$0xff]  ;;  %v419_v62 = vpack.c.bf16 %v129_v54, %v127_v53 }
  0x20   :  { %476 = vmatpush1.bf16.msra.mxu0 %v475_v38  ;;  %v134_v59 = vld [vmem:[#allocation3 + $0xb8] sm:$0xff]  ;;  %v196_v60 = vld [vmem:[#allocation3 + $0x2a8] sm:$0xff]  ;;  %v483_v63 = vpack.c.bf16 %v193_v57, %v191_v55  ;;  %v131_v1 = vld [vmem:[#allocation3 + $0xa0] sm:$0xff] }
  0x21   :  { %478 = vmatprep.subr.bf16.mxu0 %v477_v43  ;;  %v198_v61 = vld [vmem:[#allocation3 + $0x2b8] sm:$0xff]  ;;  %v421_v0 = vpack.c.bf16 %v134_v59, %v132_v58  ;;  %v133_v2 = vld [vmem:[#allocation3 + $0xb0] sm:$0xff]  ;;  %v195_v3 = vld [vmem:[#allocation3 + $0x2a0] sm:$0xff] }
  0x22   :  { %416 = vmatpush1.bf16.msra.mxu1 %v415_v48  ;;  %v485_v4 = vpack.c.bf16 %v198_v61, %v196_v60  ;;  %v197_v5 = vld [vmem:[#allocation3 + $0x2b0] sm:$0xff]  ;;  %v136_v6 = vld [vmem:[#allocation3 + $0xc8] sm:$0xff]  ;;  %v138_v7 = vld [vmem:[#allocation3 + $0xd8] sm:$0xff]  ;;  %v423_v10 = vpack.c.bf16 %v133_v2, %v131_v1 }
  0x23   :  { %418 = vmatprep.subr.bf16.mxu1 %v417_v52  ;;  %v200_v8 = vld [vmem:[#allocation3 + $0x2c8] sm:$0xff]  ;;  %v202_v9 = vld [vmem:[#allocation3 + $0x2d8] sm:$0xff]  ;;  %v487_v11 = vpack.c.bf16 %v197_v5, %v195_v3  ;;  %v425_v12 = vpack.c.bf16 %v138_v7, %v136_v6  ;;  %v135_v13 = vld [vmem:[#allocation3 + $0xc0] sm:$0xff] }
  0x24   :  { %480 = vmatpush1.bf16.msra.mxu0 %v479_v51  ;;  %v137_v14 = vld [vmem:[#allocation3 + $0xd0] sm:$0xff]  ;;  %v199_v15 = vld [vmem:[#allocation3 + $0x2c0] sm:$0xff]  ;;  %v489_v16 = vpack.c.bf16 %v202_v9, %v200_v8  ;;  %v140_v18 = vld [vmem:[#allocation3 + $0xe8] sm:$0xff] }
  0x25   :  { %482 = vmatprep.subr.bf16.mxu0 %v481_v56  ;;  %v201_v17 = vld [vmem:[#allocation3 + $0x2d0] sm:$0xff]  ;;  %v142_v19 = vld [vmem:[#allocation3 + $0xf8] sm:$0xff]  ;;  %v204_v20 = vld [vmem:[#allocation3 + $0x2e8] sm:$0xff]  ;;  %v427_v22 = vpack.c.bf16 %v137_v14, %v135_v13 }
  0x26   :  { %420 = vmatpush1.bf16.msra.mxu1 %v419_v62  ;;  %v206_v21 = vld [vmem:[#allocation3 + $0x2f8] sm:$0xff]  ;;  %v491_v23 = vpack.c.bf16 %v201_v17, %v199_v15  ;;  %v429_v24 = vpack.c.bf16 %v142_v19, %v140_v18  ;;  %v139_v25 = vld [vmem:[#allocation3 + $0xe0] sm:$0xff]  ;;  %v141_v26 = vld [vmem:[#allocation3 + $0xf0] sm:$0xff] }
  0x27   :  { %422 = vmatprep.subr.bf16.mxu1 %v421_v0  ;;  %v203_v27 = vld [vmem:[#allocation3 + $0x2e0] sm:$0xff]  ;;  %v493_v28 = vpack.c.bf16 %v206_v21, %v204_v20  ;;  %v205_v29 = vld [vmem:[#allocation3 + $0x2f0] sm:$0xff]  ;;  %v144_v30 = vld [vmem:[#allocation3 + $0x108] sm:$0xff]  ;;  %v431_v34 = vpack.c.bf16 %v141_v26, %v139_v25 }
  0x28   :  { %484 = vmatpush1.bf16.msra.mxu0 %v483_v63  ;;  %v146_v31 = vld [vmem:[#allocation3 + $0x118] sm:$0xff]  ;;  %v208_v32 = vld [vmem:[#allocation3 + $0x308] sm:$0xff]  ;;  %v495_v35 = vpack.c.bf16 %v205_v29, %v203_v27  ;;  %v143_v37 = vld [vmem:[#allocation3 + $0x100] sm:$0xff] }
  0x29   :  { %486 = vmatprep.subr.bf16.mxu0 %v485_v4  ;;  %v210_v33 = vld [vmem:[#allocation3 + $0x318] sm:$0xff]  ;;  %v433_v36 = vpack.c.bf16 %v146_v31, %v144_v30  ;;  %v145_v38 = vld [vmem:[#allocation3 + $0x110] sm:$0xff]  ;;  %v207_v39 = vld [vmem:[#allocation3 + $0x300] sm:$0xff] }
  0x2a   :  { %424 = vmatpush1.bf16.msra.mxu1 %v423_v10  ;;  %v497_v40 = vpack.c.bf16 %v210_v33, %v208_v32  ;;  %v209_v41 = vld [vmem:[#allocation3 + $0x310] sm:$0xff]  ;;  %v148_v42 = vld [vmem:[#allocation3 + $0x128] sm:$0xff]  ;;  %v150_v43 = vld [vmem:[#allocation3 + $0x138] sm:$0xff]  ;;  %v435_v46 = vpack.c.bf16 %v145_v38, %v143_v37 }
  0x2b   :  { %426 = vmatprep.subr.bf16.mxu1 %v425_v12  ;;  %v212_v44 = vld [vmem:[#allocation3 + $0x328] sm:$0xff]  ;;  %v214_v45 = vld [vmem:[#allocation3 + $0x338] sm:$0xff]  ;;  %v147_v47 = vld [vmem:[#allocation3 + $0x120] sm:$0xff]  ;;  %v499_v50 = vpack.c.bf16 %v209_v41, %v207_v39  ;;  %v437_v51 = vpack.c.bf16 %v150_v43, %v148_v42 }
  0x2c   :  { %488 = vmatpush1.bf16.msra.mxu0 %v487_v11  ;;  %v149_v48 = vld [vmem:[#allocation3 + $0x130] sm:$0xff]  ;;  %v211_v49 = vld [vmem:[#allocation3 + $0x320] sm:$0xff]  ;;  %v152_v53 = vld [vmem:[#allocation3 + $0x148] sm:$0xff]  ;;  %v501_v55 = vpack.c.bf16 %v214_v45, %v212_v44 }
  0x2d   :  { %490 = vmatprep.subr.bf16.mxu0 %v489_v16  ;;  %v213_v52 = vld [vmem:[#allocation3 + $0x330] sm:$0xff]  ;;  %v154_v54 = vld [vmem:[#allocation3 + $0x158] sm:$0xff]  ;;  %v151_v56 = vld [vmem:[#allocation3 + $0x140] sm:$0xff]  ;;  %v439_v4 = vpack.c.bf16 %v149_v48, %v147_v47 }
  0x2e   :  { %428 = vmatpush1.bf16.msra.mxu1 %v427_v22  ;;  %v153_v57 = vld [vmem:[#allocation3 + $0x150] sm:$0xff]  ;;  %v216_v58 = vld [vmem:[#allocation3 + $0x348] sm:$0xff]  ;;  %v218_v59 = vld [vmem:[#allocation3 + $0x358] sm:$0xff]  ;;  %v503_v10 = vpack.c.bf16 %v213_v52, %v211_v49  ;;  %v441_v11 = vpack.c.bf16 %v154_v54, %v152_v53 }
  0x2f   :  { %430 = vmatprep.subr.bf16.mxu1 %v429_v24  ;;  %v215_v60 = vld [vmem:[#allocation3 + $0x340] sm:$0xff]  ;;  %v217_v61 = vld [vmem:[#allocation3 + $0x350] sm:$0xff]  ;;  %v156_v62 = vld [vmem:[#allocation3 + $0x168] sm:$0xff]  ;;  %v505_v15 = vpack.c.bf16 %v218_v59, %v216_v58  ;;  %v443_v19 = vpack.c.bf16 %v153_v57, %v151_v56 }
  0x30   :  { %492 = vmatpush1.bf16.msra.mxu0 %v491_v23  ;;  %v158_v63 = vld [vmem:[#allocation3 + $0x178] sm:$0xff]  ;;  %v597_v0 = vld [vmem:[#allocation3 + $0x160] sm:$0xff]  ;;  %v599_v1 = vld [vmem:[#allocation3 + $0x170] sm:$0xff]  ;;  %v507_v23 = vpack.c.bf16 %v217_v61, %v215_v60 }
  0x31   :  { %494 = vmatprep.subr.bf16.mxu0 %v493_v28  ;;  %v220_v2 = vld [vmem:[#allocation3 + $0x368] sm:$0xff]  ;;  %v222_v3 = vld [vmem:[#allocation3 + $0x378] sm:$0xff]  ;;  %v601_v5 = vld [vmem:[#allocation3 + $0x360] sm:$0xff]  ;;  %v445_v24 = vpack.c.bf16 %v158_v63, %v156_v62  ;;  %v447_v25 = vpack.c.bf16 %v599_v1, %v597_v0 }
  0x32   :  { %432 = vmatpush1.bf16.msra.mxu1 %v431_v34  ;;  %v603_v6 = vld [vmem:[#allocation3 + $0x370] sm:$0xff]  ;;  %v605_v7 = vld [vmem:[#allocation3 + $0x188] sm:$0xff]  ;;  %v607_v8 = vld [vmem:[#allocation3 + $0x198] sm:$0xff]  ;;  %v509_v26 = vpack.c.bf16 %v222_v3, %v220_v2 }
  0x33   :  { %434 = vmatprep.subr.bf16.mxu1 %v433_v36  ;;  %v609_v9 = vld [vmem:[#allocation3 + $0x180] sm:$0xff]  ;;  %v611_v12 = vld [vmem:[#allocation3 + $0x190] sm:$0xff]  ;;  %v613_v13 = vld [vmem:[#allocation3 + $0x388] sm:$0xff]  ;;  %v511_v29 = vpack.c.bf16 %v603_v6, %v601_v5  ;;  %v449_v30 = vpack.c.bf16 %v607_v8, %v605_v7 }
  0x34   :  { %496 = vmatpush1.bf16.msra.mxu0 %v495_v35  ;;  %v615_v14 = vld [vmem:[#allocation3 + $0x398] sm:$0xff]  ;;  %v617_v16 = vld [vmem:[#allocation3 + $0x380] sm:$0xff]  ;;  %v619_v17 = vld [vmem:[#allocation3 + $0x390] sm:$0xff]  ;;  %v451_v31 = vpack.c.bf16 %v611_v12, %v609_v9 }
  0x35   :  { %498 = vmatprep.subr.bf16.mxu0 %v497_v40  ;;  %v621_v18 = vld [vmem:[#allocation3 + $0x1a8] sm:$0xff]  ;;  %v623_v20 = vld [vmem:[#allocation3 + $0x1b8] sm:$0xff]  ;;  %v625_v21 = vld [vmem:[#allocation3 + $0x1a0] sm:$0xff]  ;;  %v513_v32 = vpack.c.bf16 %v615_v14, %v613_v13  ;;  %v515_v33 = vpack.c.bf16 %v619_v17, %v617_v16 }
  0x36   :  { %436 = vmatpush1.bf16.msra.mxu1 %v435_v46  ;;  %v627_v22 = vld [vmem:[#allocation3 + $0x1b0] sm:$0xff]  ;;  %v631_v27 = vld [vmem:[#allocation3 + $0x3a8] sm:$0xff]  ;;  %v633_v28 = vld [vmem:[#allocation3 + $0x3b8] sm:$0xff]  ;;  %v453_v34 = vpack.c.bf16 %v623_v20, %v621_v18 }
  0x37   :  { %438 = vmatprep.subr.bf16.mxu1 %v437_v51  ;;  %v455_v35 = vpack.c.bf16 %v627_v22, %v625_v21  ;;  %v29_v36 = vld [vmem:[%s693_s0] sm:$0xff]  ;;  %v517_v37 = vpack.c.bf16 %v633_v28, %v631_v27  ;;  %v30_v38 = vld [vmem:[%s693_s0 + $0x8] sm:$0xff]  ;;  %v170_v61 = vld [vmem:[#allocation3 + $0x1d8] sm:$0xff] }
  0x38   :  { %500 = vmatpush1.bf16.msra.mxu0 %v499_v50  ;;  %v33_v39 = vcombine.high %v29_v36, %v29_v36  ;;  %v38_v40 = vsel %vm37_vm0, %v29_v36, -inf  ;;  %v66_v41 = vsel %vm37_vm0, %v29_v36, 0.0  ;;  %v34_v42 = vcombine.high %v30_v38, %v30_v38  ;;  %v664_v54 = vld [vmem:[#allocation3 + $0x3a0] sm:$0xff]  ;;  %v168_v60 = vld [vmem:[#allocation3 + $0x1c8] sm:$0xff]  ;;  %v169_v8 = vld [vmem:[#allocation3 + $0x1d0] sm:$0xff] }
  0x39   :  { %502 = vmatprep.subr.bf16.mxu0 %v501_v55  ;;  %v39_v43 = vrot.slane %v38_v40, 4  ;;  %v52_v44 = vsel %vm37_vm0, %v30_v38, -inf  ;;  %v67_v45 = vrot.slane %v66_v41, 4  ;;  %v80_v49 = vsel %vm37_vm0, %v30_v38, 0.0  ;;  %v666_v55 = vld [vmem:[#allocation3 + $0x3b0] sm:$0xff]  ;;  %v167_v7 = vld [vmem:[#allocation3 + $0x1c0] sm:$0xff] }
  0x3a   :  { %440 = vmatpush1.bf16.msra.mxu1 %v439_v4  ;;  %v45_v46 = vsel %vm37_vm0, %v33_v39, -inf  ;;  %v53_v47 = vrot.slane %v52_v44, 4  ;;  %v73_v48 = vsel %vm37_vm0, %v33_v39, 0.0  ;;  %v59_v51 = vsel %vm37_vm0, %v34_v42, -inf  ;;  %v232_v13 = vld [vmem:[#allocation3 + $0x3c8] sm:$0xff]  ;;  %v234_v14 = vld [vmem:[#allocation3 + $0x3d8] sm:$0xff] }
  0x3b   :  { %442 = vmatprep.subr.bf16.mxu1 %v441_v11  ;;  %v46_v50 = vrot.slane %v45_v46, 4  ;;  %v40_v52 = vmax.f32 %v38_v40, %v39_v43  ;;  %v74_v53 = vrot.slane %v73_v48, 4  ;;  %v60_v56 = vrot.slane %v59_v51, 4  ;;  %v236_v17 = vld [vmem:[#allocation3 + $0x3e8] sm:$0xff] }
  0x3c   :  { %504 = vmatpush1.bf16.msra.mxu0 %v503_v10  ;;  %v54_v57 = vmax.f32 %v52_v44, %v53_v47  ;;  %v87_v58 = vsel %vm37_vm0, %v34_v42, 0.0  ;;  %v68_v59 = vadd.f32 %v67_v45, %v66_v41  ;;  %v81_v5 = vrot.slane %v80_v49, 4  ;;  %v172_v41 = vld [vmem:[#allocation3 + $0x1e8] sm:$0xff]  ;;  %v174_v42 = vld [vmem:[#allocation3 + $0x1f8] sm:$0xff]  ;;  %v173_v47 = vld [vmem:[#allocation3 + $0x1f0] sm:$0xff] }
  0x3d   :  { %506 = vmatprep.subr.bf16.mxu0 %v505_v15  ;;  %v47_v62 = vmax.f32 %v45_v46, %v46_v50  ;;  %v41_v63 = vrot.slane %v40_v52, 2  ;;  %v75_v0 = vadd.f32 %v74_v53, %v73_v48  ;;  %v88_v1 = vrot.slane %v87_v58, 4 }
  0x3e   :  { %444 = vmatpush1.bf16.msra.mxu1 %v443_v19  ;;  %v61_v2 = vmax.f32 %v59_v51, %v60_v56  ;;  %v55_v3 = vrot.slane %v54_v57, 2  ;;  %v69_v4 = vrot.slane %v68_v59, 2  ;;  %v519_v6 = vpack.c.bf16 %v666_v55, %v664_v54  ;;  %v235_v54 = vld [vmem:[#allocation3 + $0x3e0] sm:$0xff]  ;;  %v237_v55 = vld [vmem:[#allocation3 + $0x3f0] sm:$0xff] }
  0x3f   :  { %446 = vmatprep.subr.bf16.mxu1 %v445_v24  ;;  %v48_v9 = vrot.slane %v47_v62, 2  ;;  %v76_v10 = vrot.slane %v75_v0, 2  ;;  %v89_v11 = vadd.f32 %v88_v1, %v87_v58  ;;  %v457_v12 = vpack.c.bf16 %v170_v61, %v168_v60  ;;  %v231_v24 = vld [vmem:[#allocation3 + $0x3c0] sm:$0xff] }
  0x40   :  { %508 = vmatpush1.bf16.msra.mxu0 %v507_v23  ;;  %v62_v15 = vrot.slane %v61_v2, 2  ;;  %v42_v19 = vmax.f32 %v40_v52, %v41_v63  ;;  %v82_v23 = vadd.f32 %v81_v5, %v80_v49  ;;  %v459_v36 = vpack.c.bf16 %v169_v8, %v167_v7 }
  0x41   :  { %510 = vmatprep.subr.bf16.mxu0 %v509_v26  ;;  %v49_v26 = vmax.f32 %v47_v62, %v48_v9  ;;  %v70_v39 = vadd.f32 %v69_v4, %v68_v59  ;;  %v461_v49 = vpack.c.bf16 %v174_v42, %v172_v41  ;;  %v527_v59 = vpack.c.bf16 %v237_v55, %v235_v54 }
  0x42   :  { %448 = vmatpush1.bf16.msra.mxu1 %v447_v25  ;;  %v233_v25 = vld [vmem:[#allocation3 + $0x3d0] sm:$0xff]  ;;  %v63_v38 = vmax.f32 %v61_v2, %v62_v15  ;;  %v83_v40 = vrot.slane %v82_v23, 2  ;;  %v43_v18 = vrot.slane %v42_v19, 1 }
  0x43   :  { %450 = vmatprep.subr.bf16.mxu1 %v449_v30  ;;  %v77_v30 = vadd.f32 %v76_v10, %v75_v0  ;;  %v50_v43 = vrot.slane %v49_v26, 1  ;;  %v523_v16 = vpack.c.bf16 %v233_v25, %v231_v24  ;;  %v71_v51 = vrot.slane %v70_v39, 1 }
  0x44   :  { %512 = vmatpush1.bf16.msra.mxu0 %v511_v29  ;;  %v56_v29 = vmax.f32 %v54_v57, %v55_v3  ;;  %v64_v46 = vrot.slane %v63_v38, 1  ;;  %v84_v20 = vadd.f32 %v83_v40, %v82_v23  ;;  %v44_v22 = vmax.f32 %v42_v19, %v43_v18 }
  0x45   :  { %514 = vmatprep.subr.bf16.mxu0 %v513_v32  ;;  %v90_v32 = vrot.slane %v89_v11, 2  ;;  %v78_v44 = vrot.slane %v77_v30, 1  ;;  %v51_v27 = vmax.f32 %v49_v26, %v50_v43  ;;  %v72_v60 = vadd.f32 %v71_v51, %v70_v39 }
  0x46   :  { %452 = vmatpush1.bf16.msra.mxu1 %v451_v31  ;;  %v521_v31 = vpack.c.bf16 %v234_v14, %v232_v13  ;;  %v57_v28 = vrot.slane %v56_v29, 1  ;;  %v65_v50 = vmax.f32 %v63_v38, %v64_v46  ;;  %v85_v52 = vrot.slane %v84_v20, 1 }
  0x47   :  { %454 = vmatprep.subr.bf16.mxu1 %v453_v34  ;;  %v91_v45 = vadd.f32 %v90_v32, %v89_v11  ;;  %v171_v34 = vld [vmem:[#allocation3 + $0x1e0] sm:$0xff]  ;;  %v240_v0 = vstv %s695_s2 }
  0x48   :  { %516 = vmatpush1.bf16.msra.mxu0 %v515_v33  ;;  %v238_v33 = vld [vmem:[#allocation3 + $0x3f8] sm:$0xff]  ;;  %v463_v57 = vpack.c.bf16 %v173_v47, %v171_v34  ;;  %v100_v21 = vsel %vm98_vm1, %v65_v50, %v51_v27  ;;  %v86_v61 = vadd.f32 %v85_v52, %v84_v20 }
  0x49   :  { %518 = vmatprep.subr.bf16.mxu0 %v517_v37  ;;  %v79_v37 = vadd.f32 %v78_v44, %v77_v30  ;;  %v92_v48 = vrot.slane %v91_v45, 1  ;;  %v525_v53 = vpack.c.bf16 %v238_v33, %v236_v17  ;;  %305 = vmatprep.mubr.f32.mxu1 %v100_v21 }
  0x4a   :  { %456 = vmatpush1.bf16.msra.mxu1 %v455_v35  ;;  %v58_v35 = vmax.f32 %v56_v29, %v57_v28  ;;  %v107_v63 = vsel %vm98_vm1, %v86_v61, %v72_v60 }
  0x4b   :  { %458 = vmatprep.subr.bf16.mxu1 %v457_v12  ;;  %v93_v56 = vadd.f32 %v92_v48, %v91_v45 }
  0x4c   :  { %520 = vmatpush1.bf16.msra.mxu0 %v519_v6  ;;  %v99_v62 = vsel %vm98_vm1, %v58_v35, %v44_v22 }
  0x4d   :  { %522 = vmatprep.subr.bf16.mxu0 %v521_v31  ;;  %v108_v58 = vsel %vm98_vm1, %v93_v56, %v79_v37 }
  0x4e   :  { %460 = vmatpush1.bf16.msra.mxu1 %v459_v36  ;;  %376 = vmatprep.mubr.f32.mxu0 %v108_v58 }
  0x4f   :  { %462 = vmatprep.subr.bf16.mxu1 %v461_v49 }
  0x50   :  { %524 = vmatpush1.bf16.msra.mxu0 %v523_v16 }
  0x51   :  { %526 = vmatprep.subr.bf16.mxu0 %v525_v53 }
  0x52   :  { %464 = vmatpush1.bf16.msra.mxu1 %v463_v57 }
  0x54   :  { %528 = vmatpush1.bf16.msra.mxu0 %v527_v59 }
  0x55   :  { %306 = vmatmul.mubr.f32.vlgmr.msra.gmra.mrb[0].mxu1 %v99_v62 }
  0x57   :  { %377 = vmatmul.mubr.f32.vlgmr.msra.gmra.mrb[0].mxu0 %v107_v63 }
 0x128   :  { %v307_v1 = vpop.f32.mrb[0].mxu1 }
 0x129   :  { %v308_v2 = vadd.f32 %v307_v1, %v240_v0  ;;  %v309_v3 = vpop.f32.mrb[1].mxu1 }
 0x12a   :  { %v378_v4 = vpop.f32.mrb[0].mxu0  ;;  %v310_v5 = vadd.f32 %v309_v3, %v240_v0 }
 0x12b   :  { %v380_v6 = vpop.f32.mrb[1].mxu0  ;;  %v379_v7 = vadd.f32 %v378_v4, %v308_v2 }
 0x12c   :  { %v381_v8 = vadd.f32 %v380_v6, %v310_v5 }
 0x12e   :  { %v385_v9 = vcombine.low %v379_v7, %v381_v8 }
 0x130   :  { %400 = vst.sshfl [vmem:[%s696_s3] sm:$0x33 pattern:$0x76325410] %v385_v9 }
 0x131   :  { %399 = vsyncpa [#allocation4], 1 }

</bundles_post_ra>
